<compile_context>
chip_gen: v6e
topology: v6e:2x2x1
jax: 0.10.0
libtpu: 0.0.40
codegen_flags: <defaults>
</compile_context>

<pallas_src>
import functools
import math

import jax
import jax.numpy as jnp
from jax.experimental import pallas as pl
from jax.experimental.pallas import tpu as pltpu

NUM_EMB = 32
HIDDEN = 4 * NUM_EMB          # 128
PACK = 4                      # tokens per 128-wide lane row (PACK * NUM_EMB == 128)
GRANULE = PACK * 16           # 64 tokens = 16 rows: bf16 sublane-group aligned
MIN_GRID_STEPS = 4            # keep >=2 steps so "parallel" shards across v7x TCs


def _round_up(n, m):
    return ((n + m - 1) // m) * m


def _tpu_caps():
    """Generation-aware (token-tile cap, scoped-VMEM cap)."""
    try:
        info = pltpu.get_tpu_info()
        vmem = int(getattr(info, "vmem_capacity_bytes", 0) or 0)
    except Exception:
        vmem = 0
    if vmem >= (96 << 20):            # v5e / v6e: 128 MiB VMEM per core
        return 32768, 100 << 20
    return 16384, 40 << 20            # v7x (64 MiB/TC) or unknown: conservative


_TOK_TILE_CAP, _VMEM_LIMIT_CAP = _tpu_caps()


def ffn_kernel(x_ref, w1_ref, b1_ref, w2_ref, b2_ref, o_ref):
    # x_ref : [R, 128]  f32   (PACK=4 tokens per row, lane-dense)
    # w1_ref: [128, 512] bf16 (PACK-way block-diag of the [32,128] W1)
    # b1_ref: [1, 512]   f32
    # w2_ref: [512, 128] bf16 (PACK-way block-diag of the [128,32] W2)
    # b2_ref: [1, 128]   f32
    # o_ref : [R, 128]   bf16
    x = x_ref[...].astype(jnp.bfloat16)                 # in-kernel cast (free VALU)
    h = jnp.dot(x, w1_ref[...], preferred_element_type=jnp.float32) + b1_ref[...]
    h = jnp.maximum(h, 0.0)                             # ReLU, f32 epilogue (v5e-safe)
    y = jnp.dot(h.astype(jnp.bfloat16), w2_ref[...],
                preferred_element_type=jnp.float32) + b2_ref[...]
    o_ref[...] = y.astype(o_ref.dtype)                  # bf16 writeback


def pack_ffn_params(w1, b1, w2, b2):
    """One-time packing: PACK-way block-diagonal bf16 weights, tiled f32 biases."""
    eye = jnp.eye(PACK, dtype=jnp.float32)
    w1p = jnp.kron(eye, w1).astype(jnp.bfloat16)                   # [128, 512]
    w2p = jnp.kron(eye, w2).astype(jnp.bfloat16)                   # [512, 128]
    b1p = jnp.tile(b1, PACK).reshape(1, -1).astype(jnp.float32)    # [1, 512]
    b2p = jnp.tile(b2, PACK).reshape(1, -1).astype(jnp.float32)    # [1, 128]
    return w1p, b1p, w2p, b2p


@functools.partial(jax.jit, static_argnames=("tok_tile",))
def feed_forward(x, packed_params, tok_tile=None):
    """x: [..., E] float32 -> [..., E] bfloat16 (E == NUM_EMB)."""
    w1p, b1p, w2p, b2p = packed_params
    E = x.shape[-1]
    H = 4 * E
    total = math.prod(x.shape[:-1])

    # Pad only to the 64-token granule (not to a full tile) so the free
    # row-major reshape to 128-wide rows is valid; common shapes need no pad.
    padded = _round_up(total, GRANULE)
    x2d = x.reshape(total, E)
    if padded != total:
        x2d = jnp.pad(x2d, ((0, padded - total), (0, 0)))

    rows = padded // PACK
    xp = x2d.reshape(rows, PACK * E)          # pure view: 4 tokens per 128-lane row

    # Adaptive token tile: >= MIN_GRID_STEPS grid steps when there is enough
    # work, rounded to the 64-token granule, capped per TPU generation.
    if tok_tile is None:
        tok = min(_TOK_TILE_CAP, _round_up(pl.cdiv(total, MIN_GRID_STEPS), GRANULE))
    else:
        tok = _round_up(min(int(tok_tile), _TOK_TILE_CAP), GRANULE)
    tok = max(tok, GRANULE)
    tok = min(tok, padded)
    row_tile = tok // PACK
    grid = (pl.cdiv(rows, row_tile),)         # ragged last block masked by Pallas

    # Scoped VMEM sized from the real per-step footprint:
    # ~1.4 KiB/token (f32 in x2, bf16 out x2, f32 h, bf16 h, temps) + weights.
    footprint = tok * 1400 + (1 << 20)
    vmem_limit = max(8 << 20, min(int(footprint * 1.25) + (2 << 20), _VMEM_LIMIT_CAP))

    out = pl.pallas_call(
        ffn_kernel,
        out_shape=jax.ShapeDtypeStruct((rows, PACK * E), jnp.bfloat16),
        grid_spec=pltpu.PrefetchScalarGridSpec(
            num_scalar_prefetch=0,
            grid=grid,
            in_specs=[
                pl.BlockSpec((row_tile, PACK * E), lambda i: (i, 0)),  # x  (streamed)
                pl.BlockSpec((PACK * E, PACK * H), lambda i: (0, 0)),  # w1 (resident)
                pl.BlockSpec((1, PACK * H), lambda i: (0, 0)),         # b1 (resident)
                pl.BlockSpec((PACK * H, PACK * E), lambda i: (0, 0)),  # w2 (resident)
                pl.BlockSpec((1, PACK * E), lambda i: (0, 0)),         # b2 (resident)
            ],
            out_specs=pl.BlockSpec((row_tile, PACK * E), lambda i: (i, 0)),
        ),
        compiler_params=pltpu.CompilerParams(
            dimension_semantics=("parallel",),   # shard token tiles across v7x TCs
            vmem_limit_bytes=vmem_limit,
        ),
    )(xp, w1p, b1p, w2p, b2p)

    out = out.reshape(padded, E)
    if padded != total:
        out = out[:total]
    # Kept bf16 end-to-end (no trailing f32 cast pass) per the memory-bound analysis.
    return out.reshape(*x.shape[:-1], E)


def init_params(key, num_embeddings):
    """Deterministic init mimicking PyTorch nn.Linear default (U(-1/sqrt(fan_in), +))."""
    hidden = 4 * num_embeddings
    k1, k2, k3, k4 = jax.random.split(key, 4)
    bound1 = 1.0 / jnp.sqrt(num_embeddings)
    bound2 = 1.0 / jnp.sqrt(hidden)
    # Stored as [in, out] (transpose of PyTorch's [out, in]) so the math is x @ W.
    w1 = jax.random.uniform(k1, (num_embeddings, hidden), jnp.float32, -bound1, bound1)
    b1 = jax.random.uniform(k2, (hidden,), jnp.float32, -bound1, bound1)
    w2 = jax.random.uniform(k3, (hidden, num_embeddings), jnp.float32, -bound2, bound2)
    b2 = jax.random.uniform(k4, (num_embeddings,), jnp.float32, -bound2, bound2)
    return w1, b1, w2, b2


def _reference(x, w1, b1, w2, b2):
    return jnp.maximum(x @ w1 + b1, 0.0) @ w2 + b2


if __name__ == "__main__":
    key = jax.random.PRNGKey(0)
    kx, kx2, kx3, kp = jax.random.split(key, 4)

    w1, b1, w2, b2 = init_params(kp, NUM_EMB)
    packed = pack_ffn_params(w1, b1, w2, b2)

    # Small demo shape consistent with the module: [batch=2, seq=8, emb=32].
    B, T, E = 2, 8, NUM_EMB
    x = jax.random.normal(kx, (B, T, E), jnp.float32)
    out = jax.block_until_ready(feed_forward(x, packed))
    ref = _reference(x, w1, b1, w2, b2)
    assert out.shape == (B, T, E)
    assert out.dtype == jnp.bfloat16
    # bf16 matmul inputs/output (f32 accumulation) -> relaxed tolerance vs f32 reference.
    assert jnp.allclose(out.astype(jnp.float32), ref, atol=3e-2, rtol=3e-2)

    # Ragged token count: exercises the (tiny) pad-to-64-token path.
    x2 = jax.random.normal(kx2, (3, 37, E), jnp.float32)
    out2 = jax.block_until_ready(feed_forward(x2, packed))
    ref2 = _reference(x2, w1, b1, w2, b2)
    assert jnp.allclose(out2.astype(jnp.float32), ref2, atol=3e-2, rtol=3e-2)

    # Ragged grid: last block partially out of bounds (masked writeback).
    x3 = jax.random.normal(kx3, (1, 200, E), jnp.float32)
    out3 = jax.block_until_ready(feed_forward(x3, packed, tok_tile=192))
    ref3 = _reference(x3, w1, b1, w2, b2)
    assert jnp.allclose(out3.astype(jnp.float32), ref3, atol=3e-2, rtol=3e-2)

    print("KERNEL_OK")
</pallas_src>

<mosaic_0001>
module attributes {stable_mosaic.version = 11 : i64} {
  func.func @ffn_kernel(%arg0: i32, %arg1: memref<16x128xf32, #tpu.memory_space<vmem>>, %arg2: memref<128x512xbf16, #tpu.memory_space<vmem>>, %arg3: memref<1x512xf32, #tpu.memory_space<vmem>>, %arg4: memref<512x128xbf16, #tpu.memory_space<vmem>>, %arg5: memref<1x128xf32, #tpu.memory_space<vmem>>, %arg6: memref<16x128xbf16, #tpu.memory_space<vmem>>) attributes {dimension_semantics = [#tpu.dimension_semantics<parallel>], iteration_bounds = array<i64: 1>, scalar_prefetch = 0 : i64, scratch_operands = 0 : i64, tpu.core_type = #tpu.core_type<tc>, window_params = [{transform_indices = @transform_0, window_bounds = array<i64: 16, 128>}, {pipeline_mode = #tpu.pipeline_mode<synchronous>, transform_indices = @transform_1, window_bounds = array<i64: 128, 512>}, {pipeline_mode = #tpu.pipeline_mode<synchronous>, transform_indices = @transform_2, window_bounds = array<i64: 1, 512>}, {pipeline_mode = #tpu.pipeline_mode<synchronous>, transform_indices = @transform_3, window_bounds = array<i64: 512, 128>}, {pipeline_mode = #tpu.pipeline_mode<synchronous>, transform_indices = @transform_4, window_bounds = array<i64: 1, 128>}, {transform_indices = @transform_5, window_bounds = array<i64: 16, 128>}]} {
    %c0 = arith.constant 0 : index
    %c0_0 = arith.constant 0 : index
    %0 = vector.load %arg1[%c0, %c0_0] : memref<16x128xf32, #tpu.memory_space<vmem>>, vector<16x128xf32>
    %1 = arith.truncf %0 : vector<16x128xf32> to vector<16x128xbf16>
    %c0_1 = arith.constant 0 : index
    %c0_2 = arith.constant 0 : index
    %2 = vector.load %arg2[%c0_1, %c0_2] : memref<128x512xbf16, #tpu.memory_space<vmem>>, vector<128x512xbf16>
    %cst = arith.constant dense<0.000000e+00> : vector<16x512xf32>
    %3 = tpu.matmul %1, %2, %cst {dimension_numbers = #tpu.dot_dimension_numbers<[1], [0], [0], [1], [0, 0, 1, 1], [], []>} : vector<16x128xbf16>, vector<128x512xbf16>, vector<16x512xf32> -> vector<16x512xf32>
    %c0_3 = arith.constant 0 : index
    %c0_4 = arith.constant 0 : index
    %4 = vector.load %arg3[%c0_3, %c0_4] : memref<1x512xf32, #tpu.memory_space<vmem>>, vector<1x512xf32>
    %5 = vector.broadcast %4 : vector<1x512xf32> to vector<16x512xf32>
    %6 = arith.addf %3, %5 : vector<16x512xf32>
    %cst_5 = arith.constant 0.000000e+00 : f32
    %7 = vector.broadcast %cst_5 : f32 to vector<16x512xf32>
    %8 = arith.maximumf %6, %7 : vector<16x512xf32>
    %9 = arith.truncf %8 : vector<16x512xf32> to vector<16x512xbf16>
    %c0_6 = arith.constant 0 : index
    %c0_7 = arith.constant 0 : index
    %10 = vector.load %arg4[%c0_6, %c0_7] : memref<512x128xbf16, #tpu.memory_space<vmem>>, vector<512x128xbf16>
    %cst_8 = arith.constant dense<0.000000e+00> : vector<16x128xf32>
    %11 = tpu.matmul %9, %10, %cst_8 {dimension_numbers = #tpu.dot_dimension_numbers<[1], [0], [0], [1], [0, 0, 1, 1], [], []>} : vector<16x512xbf16>, vector<512x128xbf16>, vector<16x128xf32> -> vector<16x128xf32>
    %c0_9 = arith.constant 0 : index
    %c0_10 = arith.constant 0 : index
    %12 = vector.load %arg5[%c0_9, %c0_10] : memref<1x128xf32, #tpu.memory_space<vmem>>, vector<1x128xf32>
    %13 = vector.broadcast %12 : vector<1x128xf32> to vector<16x128xf32>
    %14 = arith.addf %11, %13 : vector<16x128xf32>
    %15 = arith.truncf %14 : vector<16x128xf32> to vector<16x128xbf16>
    %c0_11 = arith.constant 0 : index
    %c0_12 = arith.constant 0 : index
    %16 = vector.load %arg6[%c0_11, %c0_12] : memref<16x128xbf16, #tpu.memory_space<vmem>>, vector<16x128xbf16>
    tpu.vector_store %arg6[%c0_11, %c0_12], %15 {strides = array<i32>} : memref<16x128xbf16, #tpu.memory_space<vmem>>, vector<16x128xbf16>,
    return
  }
  func.func @transform_0(%arg0: i32) -> (i32, i32) {
    %c0_i32 = arith.constant 0 : i32
    %c0_i32_0 = arith.constant 0 : i32
    return %arg0, %c0_i32 : i32, i32
  }
  func.func @transform_1(%arg0: i32) -> (i32, i32) {
    %c0_i32 = arith.constant 0 : i32
    %c0_i32_0 = arith.constant 0 : i32
    %c0_i32_1 = arith.constant 0 : i32
    return %c0_i32, %c0_i32_0 : i32, i32
  }
  func.func @transform_2(%arg0: i32) -> (i32, i32) {
    %c0_i32 = arith.constant 0 : i32
    %c0_i32_0 = arith.constant 0 : i32
    %c0_i32_1 = arith.constant 0 : i32
    return %c0_i32, %c0_i32_0 : i32, i32
  }
  func.func @transform_3(%arg0: i32) -> (i32, i32) {
    %c0_i32 = arith.constant 0 : i32
    %c0_i32_0 = arith.constant 0 : i32
    %c0_i32_1 = arith.constant 0 : i32
    return %c0_i32, %c0_i32_0 : i32, i32
  }
  func.func @transform_4(%arg0: i32) -> (i32, i32) {
    %c0_i32 = arith.constant 0 : i32
    %c0_i32_0 = arith.constant 0 : i32
    %c0_i32_1 = arith.constant 0 : i32
    return %c0_i32, %c0_i32_0 : i32, i32
  }
  func.func @transform_5(%arg0: i32) -> (i32, i32) {
    %c0_i32 = arith.constant 0 : i32
    %c0_i32_0 = arith.constant 0 : i32
    return %arg0, %c0_i32 : i32, i32
  }
}

</mosaic_0001>

<bundles_post_ra>
// kernel: feed_forward.1
= control target key start
LH: loop header
LB: loop body
LE: loop exit
PB: predicated region body
PF: predicated region fallthrough
CT: control target
= control target key end

     0   :  { %10 = vsyncpa [#allocation3], 0  ;;  %s1032_s0 = inlined_call_operand.vmem [shape: f32[16,128], index: 0, kind: input, shape index: {}]   ;;  %s1033_s1 = inlined_call_operand.hbm [shape: bf16[128,512], index: 1, kind: input, shape index: {}]   ;;  %s1034_s2 = inlined_call_operand.vmem [shape: f32[1,512], index: 2, kind: input, shape index: {}]   ;;  %s1035_s3 = inlined_call_operand.hbm [shape: bf16[512,128], index: 3, kind: input, shape index: {}]   ;;  %s1036_s4 = inlined_call_operand.vmem [shape: f32[1,128], index: 4, kind: input, shape index: {}]   ;;  %s1037_s5 = inlined_call_operand.vmem [shape: bf16[16,128], index: 5, kind: output, shape index: {}]  }
   0x1   :  { %11 = vsyncpa [#allocation5], 0  ;;  %s974_s18 = smov [#allocation2]  }
   0x2   :  { %s19_s19 = sshll.u32 %s974_s18, 4  ;;  %s20_s19 = int_to_ptr.vmem [resolvable:$true] %s19_s19 }
   0x3   :  { %s938_s20 = scalar_lea.vmem %s20_s19, 4096  ;;  %p943_p1 = scmp.lt.s32.totalorder %s20_s19, %s20_s19 }
   0x4   :  { %p939_p0 = scmp.ne.s32.totalorder %s20_s19, %s938_s20  ;;  %p944_p2 = scmp.lt.s32.totalorder %s938_s20, %s938_s20 }
   0x6   :  { %p945_p3 = por %p944_p2, %p943_p1 }
   0x8   :  { %p946_p4 = pnand %p945_p3, %p939_p0 }
   0xa   :  { %949 = shalt.err (!%p946_p4)
}
   0xb   :  { %s975_s21 = smov 256   ;;  %s976_s22 = smov 16  }
   0xc   :  { %25 = dma.hbm_to_vmem [thread:$0]  %s1033_s1, 4096, %s20_s19, [#allocation3], %s975_s21, %s975_s21, %s976_s22  }
   0xd   :  { %s977_s25 = smov [#allocation4]  }
   0xe   :  { %s33_s26 = sshll.u32 %s977_s25, 4  ;;  %s34_s26 = int_to_ptr.vmem [resolvable:$true] %s33_s26 }
   0xf   :  { %s958_s27 = scalar_lea.vmem %s34_s26, 4096  ;;  %p963_p6 = scmp.lt.s32.totalorder %s34_s26, %s34_s26 }
  0x10   :  { %p959_p5 = scmp.ne.s32.totalorder %s34_s26, %s958_s27  ;;  %p964_p7 = scmp.lt.s32.totalorder %s958_s27, %s958_s27 }
  0x12   :  { %p965_p8 = por %p964_p7, %p963_p6 }
  0x14   :  { %p966_p9 = pnand %p965_p8, %p959_p5 }
  0x16   :  { %969 = shalt.err (!%p966_p9)
}
  0x17   :  { %s978_s28 = smov 64   ;;  %s979_s29 = smov 4  }
  0x18   :  { %39 = dma.hbm_to_vmem [thread:$0]  %s1035_s3, 4096, %s34_s26, [#allocation5], %s978_s28, %s978_s28, %s979_s29  }
  0x19   :  { %970 = dma.done.wait [#allocation3], 4096  }
  0x1a   :  { %971 = vsyncadd [#allocation3], 4294963200 }
  0x1b   :  { %972 = dma.done.wait [#allocation5], 4096  }
  0x1c   :  { %973 = vsyncadd [#allocation5], 4294963200  ;;  %v980_v0 = vmov 0   ;;  %v850_v1 = vld [vmem:[#allocation2 + $0xe4] ss:$16 sps:$4 sm:$0xff]   ;;  %v50_v34 = vld [vmem:[%s1032_s0 + $0x8] sm:$0xff] }
  0x1d   :  { %298 = vmatprep.mubr.bf16.mxu0 %v980_v0  ;;  %341 = vmatprep.mubr.bf16.mxu1 %v980_v0  ;;  %v852_v2 = vld [vmem:[#allocation2 + $0xec] ss:$16 sps:$4 sm:$0xff]   ;;  %v854_v3 = vld [vmem:[#allocation2 + $0xe0] ss:$16 sps:$4 sm:$0xff]   ;;  %v855_v4 = vld [vmem:[#allocation2 + $0xe8] ss:$16 sps:$4 sm:$0xff]  }
  0x1e   :  { %266 = vmatprep.subr.bf16.mxu0 %v850_v1  ;;  %309 = vmatprep.subr.bf16.mxu1 %v852_v2  ;;  %v856_v5 = vld [vmem:[#allocation2 + $0xc4] ss:$16 sps:$4 sm:$0xff]   ;;  %v858_v6 = vld [vmem:[#allocation2 + $0xcc] ss:$16 sps:$4 sm:$0xff]   ;;  %v860_v7 = vld [vmem:[#allocation2 + $0xc0] ss:$16 sps:$4 sm:$0xff]  }
  0x1f   :  { %267 = vmatpush1.bf16.msra.mxu0 %v854_v3  ;;  %310 = vmatpush1.bf16.msra.mxu1 %v855_v4  ;;  %v861_v8 = vld [vmem:[#allocation2 + $0xc8] ss:$16 sps:$4 sm:$0xff]   ;;  %v862_v9 = vld [vmem:[#allocation2 + $0xa4] ss:$16 sps:$4 sm:$0xff]   ;;  %v864_v10 = vld [vmem:[#allocation2 + $0xac] ss:$16 sps:$4 sm:$0xff]   ;;  %v86_v4 = vlaneseq }
  0x20   :  { %268 = vmatprep.subr.bf16.mxu0 %v856_v5  ;;  %311 = vmatprep.subr.bf16.mxu1 %v858_v6  ;;  %v866_v11 = vld [vmem:[#allocation2 + $0xa0] ss:$16 sps:$4 sm:$0xff]   ;;  %v867_v12 = vld [vmem:[#allocation2 + $0xa8] ss:$16 sps:$4 sm:$0xff]   ;;  %v868_v13 = vld [vmem:[#allocation2 + $0x84] ss:$16 sps:$4 sm:$0xff]  }
  0x21   :  { %v870_v14 = vld [vmem:[#allocation2 + $0x8c] ss:$16 sps:$4 sm:$0xff]   ;;  %v872_v15 = vld [vmem:[#allocation2 + $0x80] ss:$16 sps:$4 sm:$0xff]   ;;  %v873_v16 = vld [vmem:[#allocation2 + $0x88] ss:$16 sps:$4 sm:$0xff]  }
  0x22   :  { %v874_v17 = vld [vmem:[#allocation2 + $0x64] ss:$16 sps:$4 sm:$0xff]   ;;  %v876_v18 = vld [vmem:[#allocation2 + $0x6c] ss:$16 sps:$4 sm:$0xff]   ;;  %v878_v19 = vld [vmem:[#allocation2 + $0x60] ss:$16 sps:$4 sm:$0xff]  }
  0x23   :  { %269 = vmatpush1.bf16.msra.mxu0 %v860_v7  ;;  %312 = vmatpush1.bf16.msra.mxu1 %v861_v8  ;;  %v879_v20 = vld [vmem:[#allocation2 + $0x68] ss:$16 sps:$4 sm:$0xff]   ;;  %v880_v21 = vld [vmem:[#allocation2 + $0x44] ss:$16 sps:$4 sm:$0xff]   ;;  %v882_v22 = vld [vmem:[#allocation2 + $0x4c] ss:$16 sps:$4 sm:$0xff]  }
  0x24   :  { %270 = vmatprep.subr.bf16.mxu0 %v862_v9  ;;  %313 = vmatprep.subr.bf16.mxu1 %v864_v10  ;;  %v884_v23 = vld [vmem:[#allocation2 + $0x40] ss:$16 sps:$4 sm:$0xff]   ;;  %v885_v24 = vld [vmem:[#allocation2 + $0x48] ss:$16 sps:$4 sm:$0xff]   ;;  %v886_v25 = vld [vmem:[#allocation2 + $0x24] ss:$16 sps:$4 sm:$0xff]  }
  0x25   :  { %v888_v26 = vld [vmem:[#allocation2 + $0x2c] ss:$16 sps:$4 sm:$0xff]   ;;  %v890_v27 = vld [vmem:[#allocation2 + $0x20] ss:$16 sps:$4 sm:$0xff]   ;;  %v891_v28 = vld [vmem:[#allocation2 + $0x28] ss:$16 sps:$4 sm:$0xff]  }
  0x26   :  { %v892_v29 = vld [vmem:[#allocation2 + $0x4] ss:$16 sps:$4 sm:$0xff]   ;;  %v894_v30 = vld [vmem:[#allocation2 + $0xc] ss:$16 sps:$4 sm:$0xff]   ;;  %v896_v31 = vld [vmem:[#allocation2] ss:$16 sps:$4 sm:$0xff]  }
  0x27   :  { %271 = vmatpush1.bf16.msra.mxu0 %v866_v11  ;;  %314 = vmatpush1.bf16.msra.mxu1 %v867_v12  ;;  %v897_v32 = vld [vmem:[#allocation2 + $0x8] ss:$16 sps:$4 sm:$0xff]   ;;  %v49_v33 = vld [vmem:[%s1032_s0] sm:$0xff]  ;;  %v902_v40 = vld [vmem:[#allocation4 + $0x70] sm:$0xff]   ;;  %v87_v5 = vshrl.u32 %v86_v4, 7 }
  0x28   :  { %272 = vmatprep.subr.bf16.mxu0 %v868_v13  ;;  %315 = vmatprep.subr.bf16.mxu1 %v870_v14  ;;  %v898_v35 = vld [vmem:[#allocation4 + $0x78] sm:$0xff]   ;;  %v51_v38 = vpack.c.bf16 %v50_v34, %v49_v33  ;;  %v903_v41 = vld [vmem:[#allocation4 + $0xf0] sm:$0xff]   ;;  %v906_v44 = vld [vmem:[#allocation4 + $0x68] sm:$0xff]  }
  0x29   :  { %v899_v36 = vld [vmem:[#allocation4 + $0xf8] sm:$0xff]   ;;  %v904_v42 = vld [vmem:[#allocation4 + $0x30] sm:$0xff]   ;;  %v907_v45 = vld [vmem:[#allocation4 + $0xe8] sm:$0xff]   ;;  %v92_v6 = vsub.s32 1, %v87_v5  ;;  %v100_v7 = vsub.s32 3, %v87_v5  ;;  %v88_v8 = vsub.s32 0, %v87_v5 }
  0x2a   :  { %v900_v37 = vld [vmem:[#allocation4 + $0x38] sm:$0xff]   ;;  %v905_v43 = vld [vmem:[#allocation4 + $0xb0] sm:$0xff]   ;;  %v908_v46 = vld [vmem:[#allocation4 + $0x28] sm:$0xff]   ;;  %v96_v9 = vsub.s32 2, %v87_v5 }
  0x2b   :  { %273 = vmatpush1.bf16.msra.mxu0 %v872_v15  ;;  %316 = vmatpush1.bf16.msra.mxu1 %v873_v16  ;;  %v901_v39 = vld [vmem:[#allocation4 + $0xb8] sm:$0xff]   ;;  %v909_v47 = vld [vmem:[#allocation4 + $0xa8] sm:$0xff]   ;;  %v910_v48 = vld [vmem:[#allocation4 + $0x60] sm:$0xff]  }
  0x2c   :  { %274 = vmatprep.subr.bf16.mxu0 %v874_v17  ;;  %317 = vmatprep.subr.bf16.mxu1 %v876_v18  ;;  %v911_v49 = vld [vmem:[#allocation4 + $0xe0] sm:$0xff]   ;;  %v914_v52 = vld [vmem:[#allocation4 + $0x58] sm:$0xff]   ;;  %v918_v56 = vld [vmem:[#allocation4 + $0x50] sm:$0xff]  }
  0x2d   :  { %v912_v50 = vld [vmem:[#allocation4 + $0x20] sm:$0xff]   ;;  %v915_v53 = vld [vmem:[#allocation4 + $0xd8] sm:$0xff]   ;;  %v919_v57 = vld [vmem:[#allocation4 + $0xd0] sm:$0xff]  }
  0x2e   :  { %v913_v51 = vld [vmem:[#allocation4 + $0xa0] sm:$0xff]   ;;  %v916_v54 = vld [vmem:[#allocation4 + $0x18] sm:$0xff]   ;;  %v920_v58 = vld [vmem:[#allocation4 + $0x10] sm:$0xff]  }
  0x2f   :  { %275 = vmatpush1.bf16.msra.mxu0 %v878_v19  ;;  %318 = vmatpush1.bf16.msra.mxu1 %v879_v20  ;;  %v917_v55 = vld [vmem:[#allocation4 + $0x98] sm:$0xff]   ;;  %v921_v59 = vld [vmem:[#allocation4 + $0x90] sm:$0xff]   ;;  %v922_v60 = vld [vmem:[#allocation4 + $0x48] sm:$0xff]  }
  0x30   :  { %276 = vmatprep.subr.bf16.mxu0 %v880_v21  ;;  %319 = vmatprep.subr.bf16.mxu1 %v882_v22  ;;  %v923_v61 = vld [vmem:[#allocation4 + $0xc8] sm:$0xff]   ;;  %v926_v0 = vld [vmem:[#allocation4 + $0x40] sm:$0xff]  }
  0x31   :  { %v924_v62 = vld [vmem:[#allocation4 + $0x8] sm:$0xff]   ;;  %v927_v1 = vld [vmem:[#allocation4 + $0xc0] sm:$0xff]  }
  0x32   :  { %v925_v63 = vld [vmem:[#allocation4 + $0x88] sm:$0xff]   ;;  %v928_v2 = vld [vmem:[#allocation4] sm:$0xff]  }
  0x33   :  { %277 = vmatpush1.bf16.msra.mxu0 %v884_v23  ;;  %320 = vmatpush1.bf16.msra.mxu1 %v885_v24  ;;  %v929_v3 = vld [vmem:[#allocation4 + $0x80] sm:$0xff]  }
  0x34   :  { %278 = vmatprep.subr.bf16.mxu0 %v886_v25  ;;  %321 = vmatprep.subr.bf16.mxu1 %v888_v26  ;;  %v84_v10 = vld [vmem:[%s1034_s2] sm:$0xf] }
  0x35   :  { %v93_v13 = vrot.slane %v84_v10, %v92_v6  ;;  %v101_v14 = vrot.slane %v84_v10, %v100_v7  ;;  %v89_v15 = vrot.slane %v84_v10, %v88_v8  ;;  %v97_v16 = vrot.slane %v84_v10, %v96_v9 }
  0x37   :  { %279 = vmatpush1.bf16.msra.mxu0 %v890_v27  ;;  %322 = vmatpush1.bf16.msra.mxu1 %v891_v28 }
  0x38   :  { %280 = vmatprep.subr.bf16.mxu0 %v892_v29  ;;  %323 = vmatprep.subr.bf16.mxu1 %v894_v30 }
  0x3b   :  { %281 = vmatpush1.bf16.msra.mxu0 %v896_v31  ;;  %324 = vmatpush1.bf16.msra.mxu1 %v897_v32 }
  0x3c   :  { %799 = vmatprep.subr.bf16.mxu0 %v898_v35  ;;  %821 = vmatprep.subr.bf16.mxu1 %v899_v36 }
  0x3e   :  { %299 = vmatmul.mubr.bf16.vlgmr.msra.gmra.mxu0 %v51_v38  ;;  %342 = vmatmul.mubr.bf16.vlgmr.msra.gmra.mxu1 %v51_v38 }
  0x3f   :  { %800 = vmatpush3.bf16.msra.mxu0 %v900_v37  ;;  %822 = vmatpush3.bf16.msra.mxu1 %v901_v39 }
  0x40   :  { %801 = vmatprep.subr.bf16.mxu0 %v902_v40  ;;  %823 = vmatprep.subr.bf16.mxu1 %v903_v41 }
  0x43   :  { %802 = vmatpush3.bf16.msra.mxu0 %v904_v42  ;;  %824 = vmatpush3.bf16.msra.mxu1 %v905_v43 }
  0x44   :  { %803 = vmatprep.subr.bf16.mxu0 %v906_v44  ;;  %825 = vmatprep.subr.bf16.mxu1 %v907_v45 }
  0x47   :  { %804 = vmatpush3.bf16.msra.mxu0 %v908_v46  ;;  %826 = vmatpush3.bf16.msra.mxu1 %v909_v47 }
  0x48   :  { %805 = vmatprep.subr.bf16.mxu0 %v910_v48  ;;  %827 = vmatprep.subr.bf16.mxu1 %v911_v49  ;;  %v757_v48 = vld [vmem:[%s1036_s4] ss:$0 sm:$0xff] }
  0x4b   :  { %806 = vmatpush3.bf16.msra.mxu0 %v912_v50  ;;  %828 = vmatpush3.bf16.msra.mxu1 %v913_v51 }
  0x4c   :  { %807 = vmatprep.subr.bf16.mxu0 %v914_v52  ;;  %829 = vmatprep.subr.bf16.mxu1 %v915_v53 }
  0x4f   :  { %808 = vmatpush3.bf16.msra.mxu0 %v916_v54  ;;  %830 = vmatpush3.bf16.msra.mxu1 %v917_v55 }
  0x50   :  { %809 = vmatprep.subr.bf16.mxu0 %v918_v56  ;;  %831 = vmatprep.subr.bf16.mxu1 %v919_v57 }
  0x53   :  { %810 = vmatpush3.bf16.msra.mxu0 %v920_v58  ;;  %832 = vmatpush3.bf16.msra.mxu1 %v921_v59 }
  0x54   :  { %811 = vmatprep.subr.bf16.mxu0 %v922_v60  ;;  %833 = vmatprep.subr.bf16.mxu1 %v923_v61 }
  0x57   :  { %812 = vmatpush3.bf16.msra.mxu0 %v924_v62  ;;  %834 = vmatpush3.bf16.msra.mxu1 %v925_v63 }
  0x58   :  { %813 = vmatprep.subr.bf16.mxu0 %v926_v0  ;;  %835 = vmatprep.subr.bf16.mxu1 %v927_v1 }
  0x5b   :  { %814 = vmatpush3.bf16.msra.mxu0 %v928_v2  ;;  %836 = vmatpush3.bf16.msra.mxu1 %v929_v3 }
  0xfe   :  { %v300_v11 = vpop.f32.mrf.mxu0  ;;  %v343_v12 = vpop.f32.mrf.mxu1 }
  0xff   :  { %v301_v25 = vadd.f32 %v300_v11, %v89_v15  ;;  %v344_v26 = vadd.f32 %v343_v12, %v97_v16 }
 0x100   :  { %v302_v17 = vpop.f32.mrf.mxu0  ;;  %v345_v18 = vpop.f32.mrf.mxu1 }
 0x101   :  { %v303_v21 = vadd.f32 %v302_v17, %v93_v13  ;;  %v346_v22 = vadd.f32 %v345_v18, %v101_v14  ;;  %v352_v37 = vmax.f32 %v301_v25, 0.0  ;;  %v354_v38 = vmax.f32 %v344_v26, 0.0 }
 0x102   :  { %v304_v19 = vpop.f32.mrf.mxu0  ;;  %v347_v20 = vpop.f32.mrf.mxu1 }
 0x103   :  { %v305_v23 = vadd.f32 %v304_v19, %v89_v15  ;;  %v348_v24 = vadd.f32 %v347_v20, %v97_v16  ;;  %v353_v33 = vmax.f32 %v303_v21, 0.0  ;;  %v355_v34 = vmax.f32 %v346_v22, 0.0 }
 0x104   :  { %v306_v27 = vpop.f32.mrf.mxu0  ;;  %v349_v28 = vpop.f32.mrf.mxu1 }
 0x105   :  { %v307_v29 = vadd.f32 %v306_v27, %v93_v13  ;;  %v350_v30 = vadd.f32 %v349_v28, %v101_v14  ;;  %v356_v31 = vmax.f32 %v305_v23, 0.0  ;;  %v358_v32 = vmax.f32 %v348_v24, 0.0 }
 0x107   :  { %v357_v35 = vmax.f32 %v307_v29, 0.0  ;;  %v359_v36 = vmax.f32 %v350_v30, 0.0  ;;  %v360_v41 = vpack.c.bf16 %v356_v31, %v352_v37  ;;  %v362_v42 = vpack.c.bf16 %v358_v32, %v354_v38 }
 0x109   :  { %v361_v39 = vpack.c.bf16 %v357_v35, %v353_v33  ;;  %v363_v40 = vpack.c.bf16 %v359_v36, %v355_v34 }
 0x10b   :  { %659 = vmatprep.mubr.bf16.mxu0 %v361_v39  ;;  %700 = vmatprep.mubr.bf16.mxu1 %v363_v40 }
 0x10c   :  { %660 = vmatmul.mubr.bf16.vlgmr.msra.gmra.mxu0 %v360_v41  ;;  %701 = vmatmul.mubr.bf16.vlgmr.msra.gmra.mxu1 %v362_v42 }
 0x1cc   :  { %v815_v43 = vpop.f32.mrf.mxu0  ;;  %v837_v44 = vpop.f32.mrf.mxu1 }
 0x1ce   :  { %v816_v45 = vpop.f32.mrf.mxu0  ;;  %v838_v46 = vpop.f32.mrf.mxu1 }
 0x1cf   :  { %v817_v47 = vadd.f32 %v816_v45, %v815_v43  ;;  %v839_v55 = vadd.f32 %v838_v46, %v837_v44 }
 0x1d0   :  { %v818_v49 = vpop.f32.mrf.mxu0  ;;  %v840_v50 = vpop.f32.mrf.mxu1 }
 0x1d1   :  { %v662_v53 = vadd.f32 %v817_v47, %v757_v48 }
 0x1d2   :  { %v819_v51 = vpop.f32.mrf.mxu0  ;;  %v841_v52 = vpop.f32.mrf.mxu1 }
 0x1d3   :  { %v820_v54 = vadd.f32 %v819_v51, %v818_v49  ;;  %v842_v57 = vadd.f32 %v841_v52, %v840_v50  ;;  %v703_v58 = vadd.f32 %v839_v55, %v662_v53 }
 0x1d5   :  { %v665_v56 = vadd.f32 %v820_v54, %v757_v48 }
 0x1d7   :  { %v706_v59 = vadd.f32 %v842_v57, %v665_v56 }
 0x1d9   :  { %v797_v60 = vpack.c.bf16 %v706_v59, %v703_v58 }
 0x1db   :  { %798 = vst [vmem:[%s1037_s5] sm:$0xff] %v797_v60  }
 0x1dc   :  { %723 = vsyncpa [#allocation3], 1 }
 0x1dd   :  { %724 = vsyncpa [#allocation5], 1 }

</bundles_post_ra>
